<compile_context>
chip_gen: v6e
topology: v6e:2x2x1
jax: 0.10.0
libtpu: 0.0.40
codegen_flags: <defaults>
</compile_context>

<pallas_src>
import functools

import jax
import jax.numpy as jnp
import numpy as np
from jax.experimental import pallas as pl
from jax.experimental.pallas import tpu as pltpu


# ----------------------------------------------------------------------------
# Fused Pallas kernel: whole MappingNet forward for one batch block
# ----------------------------------------------------------------------------

def _mapping_net_kernel(x_ref, fw_ref, ew_ref, b_ref, o_ref, *,
                        layer, k_first, k_enc, dil_enc, t_first, t_final, bblk):
    """One grid step processes `bblk` samples, time/batch packed on lanes.

    x_ref  : (1, C_in, T*bblk)          x_ref[0, c, t*bblk + b] = x[b, c, t]
    fw_ref : (C_out, k_first*C_in)      tap-flattened first conv weight
    ew_ref : (layer, C_out, k_enc*C_out) stacked tap-flattened dilated weights
    b_ref  : (layer+1, C_out, 1)        [first_b, enc_b_0, ..., enc_b_{L-1}]
    o_ref  : (1, bblk, C_out)           pooled descriptor (lane-dense)
    """
    cdtype = fw_ref.dtype

    # Single load of the input block; taps below are lane-shifted value slices.
    x = x_ref[0].astype(cdtype)                       # (C_in, T*bblk)
    n = t_first * bblk

    # ---- first: Conv1d(coeff_nc -> descriptor_nc, k=7, pad=0, bias) --------
    xk = jnp.concatenate([x[:, j * bblk: j * bblk + n] for j in range(k_first)],
                         axis=0)                      # (k_first*C_in, t_first*bblk)
    out = jnp.dot(fw_ref[...], xk,
                  preferred_element_type=jnp.float32) + b_ref[0]   # f32

    # ---- encoder_i: LeakyReLU(0.1) -> Conv1d(k=3, dil=3) ; + out[:, :, 3:-3]
    crop = ((k_enc - 1) * dil_enc // 2) * bblk        # 3 time steps -> 3*bblk lanes
    step = dil_enc * bblk
    for i in range(layer):
        n_out = n - (k_enc - 1) * step
        h = jnp.where(out >= 0.0, out, 0.1 * out).astype(cdtype)   # lrelu once per layer
        xk = jnp.concatenate([h[:, j * step: j * step + n_out] for j in range(k_enc)],
                             axis=0)                  # (k_enc*C_out, n_out)
        y = jnp.dot(ew_ref[i], xk,
                    preferred_element_type=jnp.float32) + b_ref[i + 1]
        out = y + out[:, crop: crop + n_out]          # residual from pre-activation (f32)
        n = n_out

    # ---- AdaptiveAvgPool1d(1): mean over the t_final valid time steps per sample.
    # poolT[b, t*bblk + b'] = (b == b') / t_final ; sums only valid lanes.
    eye = (jax.lax.broadcasted_iota(jnp.int32, (bblk, bblk), 0)
           == jax.lax.broadcasted_iota(jnp.int32, (bblk, bblk), 1)).astype(jnp.float32)
    poolT = jnp.concatenate([eye] * t_final, axis=1) * jnp.float32(1.0 / t_final)
    pooled = jax.lax.dot_general(poolT, out, (((1,), (1,)), ((), ())),
                                 preferred_element_type=jnp.float32)  # (bblk, C_out)
    o_ref[0] = pooled.astype(o_ref.dtype)


# ----------------------------------------------------------------------------
# One-time weight preparation (tap-flattening + stacking) and the forward call
# ----------------------------------------------------------------------------

def prepare_mapping_net_weights(params, compute_dtype=jnp.float32):
    """Flatten / stack the PyTorch-layout weights once (not per forward call).

    compute_dtype: dtype fed to the MXU (use jnp.bfloat16 at real StyleHEAT
    sizes, descriptor_nc=256); accumulation and biases stay float32.
    """
    first_w = jnp.asarray(params['first_w'])          # (C_out, C_in, 7)
    c_out, c_in, k_first = first_w.shape
    layer = len(params['encoder'])
    assert layer >= 1, "this fused kernel expects at least one encoder layer"
    k_enc = jnp.asarray(params['encoder'][0]['w']).shape[2]

    # tap-flattened weights: wflat[o, j*C_in + c] = w[o, c, j]
    def flat(w):
        co, ci, k = w.shape
        return jnp.transpose(w, (0, 2, 1)).reshape(co, k * ci)

    fw = flat(first_w).astype(compute_dtype)                              # (C_out, 7*C_in)
    ew = jnp.stack([flat(jnp.asarray(p['w'])) for p in params['encoder']]
                   ).astype(compute_dtype)                                # (layer, C_out, 3*C_out)
    bias = jnp.stack([jnp.asarray(params['first_b'])]
                     + [jnp.asarray(p['b']) for p in params['encoder']])
    bias = bias.reshape(layer + 1, c_out, 1).astype(jnp.float32)          # (layer+1, C_out, 1)

    return dict(first_w=fw, enc_w=ew, bias=bias, layer=layer,
                k_first=int(k_first), k_enc=int(k_enc), dil_enc=3,
                coeff_nc=int(c_in), descriptor_nc=int(c_out))


def mapping_net_forward(prepared, input_3dmm):
    """input_3dmm: (B, coeff_nc, T) -> (B, descriptor_nc, 1)."""
    x = jnp.asarray(input_3dmm, jnp.float32)
    B, c_in, T = x.shape
    layer = prepared['layer']
    k_first, k_enc, dil = prepared['k_first'], prepared['k_enc'], prepared['dil_enc']
    c_out = prepared['descriptor_nc']
    assert c_in == prepared['coeff_nc']

    t_first = T - (k_first - 1)
    t_final = t_first - layer * (k_enc - 1) * dil
    assert t_final >= 1, "sequence too short for this depth (need T >= 6*(layer+1)+1)"

    # Batch blocking: at most 2 grid steps.  Two balanced steps feed both
    # v7x TensorCores; on single-TC v5e/v6e the extra step costs ~0.35 us
    # while the rest of the batch is packed into the matmul N dimension.
    n_steps = 2 if (B >= 2 and B % 2 == 0) else 1
    bblk = B // n_steps

    # Pack batch along lanes: x_p[g, c, t*bblk + b] = x[g*bblk + b, c, t]
    x_p = jnp.transpose(x.reshape(n_steps, bblk, c_in, T),
                        (0, 2, 3, 1)).reshape(n_steps, c_in, T * bblk)

    fw, ew, bias = prepared['first_w'], prepared['enc_w'], prepared['bias']
    kernel = functools.partial(
        _mapping_net_kernel, layer=layer, k_first=k_first, k_enc=k_enc,
        dil_enc=dil, t_first=t_first, t_final=t_final, bblk=bblk)

    # VMEM footprint is tiny here; at real StyleHEAT sizes (descriptor_nc=256,
    # long T) re-derive against v7x's 32 MiB scoped default and set
    # vmem_limit_bytes / tile T if needed.
    out3 = pl.pallas_call(
        kernel,
        out_shape=jax.ShapeDtypeStruct((n_steps, bblk, c_out), jnp.float32),
        grid=(n_steps,),
        in_specs=[
            pl.BlockSpec((1, c_in, T * bblk), lambda g: (g, 0, 0)),
            pl.BlockSpec(fw.shape, lambda g: (0, 0)),
            pl.BlockSpec(ew.shape, lambda g: (0, 0, 0)),
            pl.BlockSpec(bias.shape, lambda g: (0, 0, 0)),
        ],
        out_specs=pl.BlockSpec((1, bblk, c_out), lambda g: (g, 0, 0)),
        compiler_params=pltpu.CompilerParams(dimension_semantics=("parallel",)),
    )(x_p, fw, ew, bias)

    # (n_steps, bblk, C_out) lane-dense kernel output -> PyTorch (B, C_out, 1)
    return out3.reshape(B, c_out)[:, :, None]


# ----------------------------------------------------------------------------
# Pure-JAX reference (for correctness check) and deterministic parameter init
# ----------------------------------------------------------------------------

def mapping_net_reference(params, x):
    def conv1d(h, w, b, dil):
        bb, cin, tt = h.shape
        cout, _, k = w.shape
        t_out = tt - (k - 1) * dil
        acc = jnp.zeros((bb, cout, t_out), jnp.float32) + b[None, :, None]
        for j in range(k):
            acc = acc + jnp.einsum('oc,bct->bot', w[:, :, j],
                                   h[:, :, j * dil:j * dil + t_out],
                                   precision=jax.lax.Precision.HIGHEST)
        return acc

    out = conv1d(x, params['first_w'], params['first_b'], 1)
    for p in params['encoder']:
        h = jnp.where(out >= 0.0, out, 0.1 * out)
        out = conv1d(h, p['w'], p['b'], 3) + out[:, :, 3:-3]
    return jnp.mean(out, axis=2, keepdims=True)


def init_mapping_net_params(seed, coeff_nc, descriptor_nc, layer):
    key = jax.random.PRNGKey(seed)
    ks = jax.random.split(key, 2 * (layer + 1))
    params = {
        'first_w': (0.1 * jax.random.normal(ks[0], (descriptor_nc, coeff_nc, 7))).astype(jnp.float32),
        'first_b': (0.02 * jax.random.normal(ks[1], (descriptor_nc,))).astype(jnp.float32),
        'encoder': [],
    }
    for i in range(layer):
        params['encoder'].append({
            'w': (0.1 * jax.random.normal(ks[2 + 2 * i], (descriptor_nc, descriptor_nc, 3))).astype(jnp.float32),
            'b': (0.02 * jax.random.normal(ks[3 + 2 * i], (descriptor_nc,))).astype(jnp.float32),
        })
    return params


# ----------------------------------------------------------------------------

if __name__ == "__main__":
    # MappingNet(coeff_nc=16, descriptor_nc=32, layer=3); T=32 -> final length 8
    B, coeff_nc, descriptor_nc, layer, T = 2, 16, 32, 3, 32

    key = jax.random.PRNGKey(0)
    input_3dmm = jax.random.normal(key, (B, coeff_nc, T), jnp.float32)
    params = init_mapping_net_params(seed=42, coeff_nc=coeff_nc,
                                     descriptor_nc=descriptor_nc, layer=layer)

    ref = jax.block_until_ready(mapping_net_reference(params, input_3dmm))

    # f32 MXU path (default) — prepare weights once, reuse across calls.
    prepared_f32 = prepare_mapping_net_weights(params, compute_dtype=jnp.float32)
    out = jax.block_until_ready(mapping_net_forward(prepared_f32, input_3dmm))
    assert out.shape == (B, descriptor_nc, 1)
    assert bool(jnp.all(jnp.isfinite(out)))
    np.testing.assert_allclose(np.asarray(out), np.asarray(ref), rtol=1e-2, atol=1e-2)

    # bf16 MXU path (recommended at real StyleHEAT sizes, descriptor_nc=256);
    # accumulation / bias / residual / pooling stay f32 inside the kernel.
    prepared_bf16 = prepare_mapping_net_weights(params, compute_dtype=jnp.bfloat16)
    out_bf16 = jax.block_until_ready(mapping_net_forward(prepared_bf16, input_3dmm))
    np.testing.assert_allclose(np.asarray(out_bf16), np.asarray(ref), rtol=5e-2, atol=5e-2)

    print("KERNEL_OK")
</pallas_src>

<mosaic_0001>
module attributes {stable_mosaic.version = 11 : i64} {
  func.func @_mapping_net_kernel(%arg0: i32, %arg1: memref<1x16x32xf32, #tpu.memory_space<vmem>>, %arg2: memref<32x112xf32, #tpu.memory_space<vmem>>, %arg3: memref<3x32x96xf32, #tpu.memory_space<vmem>>, %arg4: memref<4x32x1xf32, #tpu.memory_space<vmem>>, %arg5: memref<1x1x32xf32, #tpu.memory_space<vmem>>) attributes {dimension_semantics = [#tpu.dimension_semantics<parallel>], iteration_bounds = array<i64: 2>, scalar_prefetch = 0 : i64, scratch_operands = 0 : i64, tpu.core_type = #tpu.core_type<tc>, window_params = [{transform_indices = @transform_0, window_bounds = array<i64: 1, 16, 32>}, {pipeline_mode = #tpu.pipeline_mode<synchronous>, transform_indices = @transform_1, window_bounds = array<i64: 32, 112>}, {pipeline_mode = #tpu.pipeline_mode<synchronous>, transform_indices = @transform_2, window_bounds = array<i64: 3, 32, 96>}, {pipeline_mode = #tpu.pipeline_mode<synchronous>, transform_indices = @transform_3, window_bounds = array<i64: 4, 32, 1>}, {transform_indices = @transform_4, window_bounds = array<i64: 1, 1, 32>}]} {
    %c0 = arith.constant 0 : index
    %c0_0 = arith.constant 0 : index
    %c0_1 = arith.constant 0 : index
    %0 = vector.load %arg1[%c0, %c0_0, %c0_1] : memref<1x16x32xf32, #tpu.memory_space<vmem>>, vector<1x16x32xf32>
    %1 = vector.shape_cast %0 : vector<1x16x32xf32> to vector<16x32xf32>
    %2 = vector.extract_strided_slice %1 {offsets = [0, 0], sizes = [16, 26], strides = [1, 1]} : vector<16x32xf32> to vector<16x26xf32>
    %3 = vector.extract_strided_slice %1 {offsets = [0, 1], sizes = [16, 26], strides = [1, 1]} : vector<16x32xf32> to vector<16x26xf32>
    %4 = vector.extract_strided_slice %1 {offsets = [0, 2], sizes = [16, 26], strides = [1, 1]} : vector<16x32xf32> to vector<16x26xf32>
    %5 = vector.extract_strided_slice %1 {offsets = [0, 3], sizes = [16, 26], strides = [1, 1]} : vector<16x32xf32> to vector<16x26xf32>
    %6 = vector.extract_strided_slice %1 {offsets = [0, 4], sizes = [16, 26], strides = [1, 1]} : vector<16x32xf32> to vector<16x26xf32>
    %7 = vector.extract_strided_slice %1 {offsets = [0, 5], sizes = [16, 26], strides = [1, 1]} : vector<16x32xf32> to vector<16x26xf32>
    %8 = vector.extract_strided_slice %1 {offsets = [0, 6], sizes = [16, 26], strides = [1, 1]} : vector<16x32xf32> to vector<16x26xf32>
    %9 = tpu.concatenate %2, %3, %4, %5, %6, %7, %8 in 0 : vector<16x26xf32>, vector<16x26xf32>, vector<16x26xf32>, vector<16x26xf32>, vector<16x26xf32>, vector<16x26xf32>, vector<16x26xf32> -> vector<112x26xf32>
    %c0_2 = arith.constant 0 : index
    %c0_3 = arith.constant 0 : index
    %10 = vector.load %arg2[%c0_2, %c0_3] : memref<32x112xf32, #tpu.memory_space<vmem>>, vector<32x112xf32>
    %cst = arith.constant dense<0.000000e+00> : vector<32x26xf32>
    %11 = tpu.matmul %10, %9, %cst {dimension_numbers = #tpu.dot_dimension_numbers<[1], [0], [0], [1], [0, 0, 1, 1], [], []>} : vector<32x112xf32>, vector<112x26xf32>, vector<32x26xf32> -> vector<32x26xf32>
    %c0_4 = arith.constant 0 : index
    %c0_5 = arith.constant 0 : index
    %c0_6 = arith.constant 0 : index
    %12 = vector.load %arg4[%c0_4, %c0_5, %c0_6] : memref<4x32x1xf32, #tpu.memory_space<vmem>>, vector<1x32x1xf32>
    %13 = vector.shape_cast %12 : vector<1x32x1xf32> to vector<32x1xf32>
    %14 = vector.broadcast %13 : vector<32x1xf32> to vector<32x26xf32>
    %15 = arith.addf %11, %14 : vector<32x26xf32>
    %cst_7 = arith.constant 0.000000e+00 : f32
    %16 = vector.broadcast %cst_7 : f32 to vector<32x26xf32>
    %17 = arith.cmpf oge, %15, %16 : vector<32x26xf32>
    %cst_8 = arith.constant 1.000000e-01 : f32
    %18 = vector.broadcast %cst_8 : f32 to vector<32x26xf32>
    %19 = arith.mulf %18, %15 : vector<32x26xf32>
    %20 = arith.select %17, %15, %19 : vector<32x26xi1>, vector<32x26xf32>
    %21 = vector.extract_strided_slice %20 {offsets = [0, 0], sizes = [32, 20], strides = [1, 1]} : vector<32x26xf32> to vector<32x20xf32>
    %22 = vector.extract_strided_slice %20 {offsets = [0, 3], sizes = [32, 20], strides = [1, 1]} : vector<32x26xf32> to vector<32x20xf32>
    %23 = vector.extract_strided_slice %20 {offsets = [0, 6], sizes = [32, 20], strides = [1, 1]} : vector<32x26xf32> to vector<32x20xf32>
    %24 = tpu.concatenate %21, %22, %23 in 0 : vector<32x20xf32>, vector<32x20xf32>, vector<32x20xf32> -> vector<96x20xf32>
    %c0_9 = arith.constant 0 : index
    %c0_10 = arith.constant 0 : index
    %c0_11 = arith.constant 0 : index
    %25 = vector.load %arg3[%c0_9, %c0_10, %c0_11] : memref<3x32x96xf32, #tpu.memory_space<vmem>>, vector<1x32x96xf32>
    %26 = vector.shape_cast %25 : vector<1x32x96xf32> to vector<32x96xf32>
    %cst_12 = arith.constant dense<0.000000e+00> : vector<32x20xf32>
    %27 = tpu.matmul %26, %24, %cst_12 {dimension_numbers = #tpu.dot_dimension_numbers<[1], [0], [0], [1], [0, 0, 1, 1], [], []>} : vector<32x96xf32>, vector<96x20xf32>, vector<32x20xf32> -> vector<32x20xf32>
    %c1 = arith.constant 1 : index
    %c0_13 = arith.constant 0 : index
    %c0_14 = arith.constant 0 : index
    %28 = vector.load %arg4[%c1, %c0_13, %c0_14] : memref<4x32x1xf32, #tpu.memory_space<vmem>>, vector<1x32x1xf32>
    %29 = vector.shape_cast %28 : vector<1x32x1xf32> to vector<32x1xf32>
    %30 = vector.broadcast %29 : vector<32x1xf32> to vector<32x20xf32>
    %31 = arith.addf %27, %30 : vector<32x20xf32>
    %32 = vector.extract_strided_slice %15 {offsets = [0, 3], sizes = [32, 20], strides = [1, 1]} : vector<32x26xf32> to vector<32x20xf32>
    %33 = arith.addf %31, %32 : vector<32x20xf32>
    %cst_15 = arith.constant 0.000000e+00 : f32
    %34 = vector.broadcast %cst_15 : f32 to vector<32x20xf32>
    %35 = arith.cmpf oge, %33, %34 : vector<32x20xf32>
    %cst_16 = arith.constant 1.000000e-01 : f32
    %36 = vector.broadcast %cst_16 : f32 to vector<32x20xf32>
    %37 = arith.mulf %36, %33 : vector<32x20xf32>
    %38 = arith.select %35, %33, %37 : vector<32x20xi1>, vector<32x20xf32>
    %39 = vector.extract_strided_slice %38 {offsets = [0, 0], sizes = [32, 14], strides = [1, 1]} : vector<32x20xf32> to vector<32x14xf32>
    %40 = vector.extract_strided_slice %38 {offsets = [0, 3], sizes = [32, 14], strides = [1, 1]} : vector<32x20xf32> to vector<32x14xf32>
    %41 = vector.extract_strided_slice %38 {offsets = [0, 6], sizes = [32, 14], strides = [1, 1]} : vector<32x20xf32> to vector<32x14xf32>
    %42 = tpu.concatenate %39, %40, %41 in 0 : vector<32x14xf32>, vector<32x14xf32>, vector<32x14xf32> -> vector<96x14xf32>
    %c1_17 = arith.constant 1 : index
    %c0_18 = arith.constant 0 : index
    %c0_19 = arith.constant 0 : index
    %43 = vector.load %arg3[%c1_17, %c0_18, %c0_19] : memref<3x32x96xf32, #tpu.memory_space<vmem>>, vector<1x32x96xf32>
    %44 = vector.shape_cast %43 : vector<1x32x96xf32> to vector<32x96xf32>
    %cst_20 = arith.constant dense<0.000000e+00> : vector<32x14xf32>
    %45 = tpu.matmul %44, %42, %cst_20 {dimension_numbers = #tpu.dot_dimension_numbers<[1], [0], [0], [1], [0, 0, 1, 1], [], []>} : vector<32x96xf32>, vector<96x14xf32>, vector<32x14xf32> -> vector<32x14xf32>
    %c2 = arith.constant 2 : index
    %c0_21 = arith.constant 0 : index
    %c0_22 = arith.constant 0 : index
    %46 = vector.load %arg4[%c2, %c0_21, %c0_22] : memref<4x32x1xf32, #tpu.memory_space<vmem>>, vector<1x32x1xf32>
    %47 = vector.shape_cast %46 : vector<1x32x1xf32> to vector<32x1xf32>
    %48 = vector.broadcast %47 : vector<32x1xf32> to vector<32x14xf32>
    %49 = arith.addf %45, %48 : vector<32x14xf32>
    %50 = vector.extract_strided_slice %33 {offsets = [0, 3], sizes = [32, 14], strides = [1, 1]} : vector<32x20xf32> to vector<32x14xf32>
    %51 = arith.addf %49, %50 : vector<32x14xf32>
    %cst_23 = arith.constant 0.000000e+00 : f32
    %52 = vector.broadcast %cst_23 : f32 to vector<32x14xf32>
    %53 = arith.cmpf oge, %51, %52 : vector<32x14xf32>
    %cst_24 = arith.constant 1.000000e-01 : f32
    %54 = vector.broadcast %cst_24 : f32 to vector<32x14xf32>
    %55 = arith.mulf %54, %51 : vector<32x14xf32>
    %56 = arith.select %53, %51, %55 : vector<32x14xi1>, vector<32x14xf32>
    %57 = vector.extract_strided_slice %56 {offsets = [0, 0], sizes = [32, 8], strides = [1, 1]} : vector<32x14xf32> to vector<32x8xf32>
    %58 = vector.extract_strided_slice %56 {offsets = [0, 3], sizes = [32, 8], strides = [1, 1]} : vector<32x14xf32> to vector<32x8xf32>
    %59 = vector.extract_strided_slice %56 {offsets = [0, 6], sizes = [32, 8], strides = [1, 1]} : vector<32x14xf32> to vector<32x8xf32>
    %60 = tpu.concatenate %57, %58, %59 in 0 : vector<32x8xf32>, vector<32x8xf32>, vector<32x8xf32> -> vector<96x8xf32>
    %c2_25 = arith.constant 2 : index
    %c0_26 = arith.constant 0 : index
    %c0_27 = arith.constant 0 : index
    %61 = vector.load %arg3[%c2_25, %c0_26, %c0_27] : memref<3x32x96xf32, #tpu.memory_space<vmem>>, vector<1x32x96xf32>
    %62 = vector.shape_cast %61 : vector<1x32x96xf32> to vector<32x96xf32>
    %cst_28 = arith.constant dense<0.000000e+00> : vector<32x8xf32>
    %63 = tpu.matmul %62, %60, %cst_28 {dimension_numbers = #tpu.dot_dimension_numbers<[1], [0], [0], [1], [0, 0, 1, 1], [], []>} : vector<32x96xf32>, vector<96x8xf32>, vector<32x8xf32> -> vector<32x8xf32>
    %c3 = arith.constant 3 : index
    %c0_29 = arith.constant 0 : index
    %c0_30 = arith.constant 0 : index
    %64 = vector.load %arg4[%c3, %c0_29, %c0_30] : memref<4x32x1xf32, #tpu.memory_space<vmem>>, vector<1x32x1xf32>
    %65 = vector.shape_cast %64 : vector<1x32x1xf32> to vector<32x1xf32>
    %66 = vector.broadcast %65 : vector<32x1xf32> to vector<32x8xf32>
    %67 = arith.addf %63, %66 : vector<32x8xf32>
    %68 = vector.extract_strided_slice %51 {offsets = [0, 3], sizes = [32, 8], strides = [1, 1]} : vector<32x14xf32> to vector<32x8xf32>
    %69 = arith.addf %67, %68 : vector<32x8xf32>
    %70 = tpu.iota {dimensions = array<i32: 0>} : vector<1x1xi32>
    %71 = tpu.iota {dimensions = array<i32: 1>} : vector<1x1xi32>
    %72 = arith.cmpi eq, %70, %71 : vector<1x1xi32>
    %73 = arith.extui %72 : vector<1x1xi1> to vector<1x1xi32>
    %74 = arith.sitofp %73 : vector<1x1xi32> to vector<1x1xf32>
    %75 = tpu.concatenate %74, %74, %74, %74, %74, %74, %74, %74 in 1 : vector<1x1xf32>, vector<1x1xf32>, vector<1x1xf32>, vector<1x1xf32>, vector<1x1xf32>, vector<1x1xf32>, vector<1x1xf32>, vector<1x1xf32> -> vector<1x8xf32>
    %cst_31 = arith.constant 1.250000e-01 : f32
    %76 = vector.broadcast %cst_31 : f32 to vector<1x8xf32>
    %77 = arith.mulf %75, %76 : vector<1x8xf32>
    %cst_32 = arith.constant dense<0.000000e+00> : vector<1x32xf32>
    %78 = tpu.matmul %77, %69, %cst_32 {dimension_numbers = #tpu.dot_dimension_numbers<[1], [1], [0], [0], [0, 0, 1, 0], [], []>} : vector<1x8xf32>, vector<32x8xf32>, vector<1x32xf32> -> vector<1x32xf32>
    %c0_33 = arith.constant 0 : index
    %c0_34 = arith.constant 0 : index
    %c0_35 = arith.constant 0 : index
    %79 = vector.load %arg5[%c0_33, %c0_34, %c0_35] : memref<1x1x32xf32, #tpu.memory_space<vmem>>, vector<1x1x32xf32>
    %80 = vector.shape_cast %79 : vector<1x1x32xf32> to vector<1x32xf32>
    %81 = vector.shape_cast %78 : vector<1x32xf32> to vector<1x1x32xf32>
    tpu.vector_store %arg5[%c0_33, %c0_34, %c0_35], %81 {strides = array<i32>} : memref<1x1x32xf32, #tpu.memory_space<vmem>>, vector<1x1x32xf32>,
    return
  }
  func.func @transform_0(%arg0: i32) -> (i32, i32, i32) {
    %c0_i32 = arith.constant 0 : i32
    %c0_i32_0 = arith.constant 0 : i32
    %c0_i32_1 = arith.constant 0 : i32
    return %arg0, %c0_i32, %c0_i32_0 : i32, i32, i32
  }
  func.func @transform_1(%arg0: i32) -> (i32, i32) {
    %c0_i32 = arith.constant 0 : i32
    %c0_i32_0 = arith.constant 0 : i32
    %c0_i32_1 = arith.constant 0 : i32
    return %c0_i32, %c0_i32_0 : i32, i32
  }
  func.func @transform_2(%arg0: i32) -> (i32, i32, i32) {
    %c0_i32 = arith.constant 0 : i32
    %c0_i32_0 = arith.constant 0 : i32
    %c0_i32_1 = arith.constant 0 : i32
    %c0_i32_2 = arith.constant 0 : i32
    return %c0_i32, %c0_i32_0, %c0_i32_1 : i32, i32, i32
  }
  func.func @transform_3(%arg0: i32) -> (i32, i32, i32) {
    %c0_i32 = arith.constant 0 : i32
    %c0_i32_0 = arith.constant 0 : i32
    %c0_i32_1 = arith.constant 0 : i32
    %c0_i32_2 = arith.constant 0 : i32
    return %c0_i32, %c0_i32_0, %c0_i32_1 : i32, i32, i32
  }
  func.func @transform_4(%arg0: i32) -> (i32, i32, i32) {
    %c0_i32 = arith.constant 0 : i32
    %c0_i32_0 = arith.constant 0 : i32
    %c0_i32_1 = arith.constant 0 : i32
    return %arg0, %c0_i32, %c0_i32_0 : i32, i32, i32
  }
}

</mosaic_0001>

<bundles_post_ra>
// kernel: tpu_custom_call.1
= control target key start
LH: loop header
LB: loop body
LE: loop exit
PB: predicated region body
PF: predicated region fallthrough
CT: control target
= control target key end

     0   :  { %9 = vsyncpa [#allocation3], 0  ;;  %s1938_s0 = inlined_call_operand.vmem [shape: f32[2,16,32], index: 0, kind: input, shape index: {}]   ;;  %s1939_s1 = inlined_call_operand.hbm [shape: f32[32,112], index: 1, kind: input, shape index: {}]   ;;  %s1940_s2 = inlined_call_operand.vmem [shape: f32[3,32,96], index: 2, kind: input, shape index: {}]   ;;  %s1941_s3 = inlined_call_operand.vmem [shape: f32[4,32,1], index: 3, kind: input, shape index: {}]   ;;  %s1942_s4 = inlined_call_operand.hbm [shape: f32[2,1,32], index: 4, kind: output, shape index: {}]  }
   0x1   :  { %10 = vsyncpa [#allocation4], 0 }
   0x2   :  { %12 = vsyncpa [#allocation4 + $0x1], 0  ;;  %s1616_s15 = smov 0   ;;  %s1618_s16 = smov 0  }
   0x3   :  { %s1620_s17 = smov 0   ;;  %s1622_s18 = smov 0  }
   0x4 LB: > { %s1637_s19 = sadd.s32 4294967295, %s1569_s18   ;;  %s1149_s20 = sadd.s32 4294967294, %s1569_s18   ;;  %s1569_s18 = sphi %s1622_s18, %s1950_s18   ;;  %s1565_s17 = sphi %s1620_s17, %s1949_s17   ;;  %s1561_s16 = sphi %s1618_s16, %s1948_s16   ;;  %s1557_s15 = sphi %s1616_s15, %s1947_s15  }
   0x5   : > { %s1641_s21 = sadd.s32 1, %s1569_s18   ;;  %s114_s22 = sadd.s32 1, %s1565_s17 }
   0x6   : > { %s111_s23 = ssub.s32 %s1569_s18, %s1641_s21  ;;  %p124_p0 = scmp.ne.s32.totalorder %s1565_s17, %s1561_s16 }
   0x7   : > { %p112_p1 = scmp.eq.s32.totalorder %s111_s23, 0  ;;  %p125_p2 = scmp.eq.s32.totalorder %s1637_s19, 1 }
   0x8   : > { %p130_p3 = scmp.ne.s32.totalorder %s1561_s16, %s1557_s15  ;;  %p131_p4 = scmp.eq.s32.totalorder %s1149_s20, 1 }
   0x9   : > { %s1652_s24 = scalar_select %p112_p1, %s1565_s17, %s114_s22  }
   0xa   : > { %p1654_p5 = por %p125_p2, %p124_p0  ;;  %p1658_p6 = por %p131_p4, %p130_p3 }
   0xb   : > { %p1150_p7 = scmp.ge.s32.totalorder %s1569_s18, 1  ;;  %p138_p8 = scmp.lt.s32.totalorder %s1569_s18, 3 }
   0xc   : > { %s1944_s26 = scalar_select %p1658_p6, 1, 0 }
   0xd   : > { %p1423_p9 = scmp.eq.s32.totalorder %s1637_s19, 0  ;;  %p1665_p10 = pnand %p1150_p7, %p138_p8 }
   0xe   : > { %s1571_s28 = smov [#allocation2]  }
   0xf   : > { %s150_s29 = sshll.u32 %s1571_s28, 4  ;;  %p1415_p11 = pneg %p1665_p10  ;;  %s151_s29 = int_to_ptr.vmem [resolvable:$true] %s150_s29 }
  0x10   : > { %s1490_s30 = scalar_lea.vmem %s151_s29, 512  ;;  %p1498_p3 = scmp.lt.s32.totalorder %s151_s29, %s151_s29 }
  0x11   : > { %p1416_p12 = pnand %p1423_p9, %p1415_p11  ;;  %p1491_p0 = scmp.ne.s32.totalorder %s151_s29, %s1490_s30 }
  0x12   : > { %p1499_p4 = scmp.lt.s32.totalorder %s1490_s30, %s1490_s30 }
  0x13   : > { %p1481_p13 = pneg %p1416_p12 }
  0x14   : > { %p1500_p6 = por %p1499_p4, %p1498_p3 }
  0x15   : > { %p1493_p1 = pnand %p1491_p0, %p1481_p13 }
  0x17   : > { %p1494_p2 = pneg %p1493_p1 }
  0x19   : > { %p1501_p7 = pnand %p1500_p6, %p1494_p2 }
  0x1b   : > { %1504 = shalt.err (!%p1501_p7)
}
  0x1c   : > { %s1572_s5 = smov 128   ;;  %s1573_s6 = smov 8  }
  0x1d   : > { %1418 = dma.hbm_to_vmem [thread:$0]  (!%p1416_p12), %s1939_s1, 512, %s151_s29, [#allocation3], %s1572_s5, %s1572_s5, %s1573_s6  }
  0x1e   : > { %180 = sbr.rel (%p1665_p10) target bundleno = 1638 (0x666), region = 36 }
  0x23   : > { %1548 = dma.done.wait (%p1423_p9), [#allocation3], 512  }
  0x24   : > { %1550 = vsyncadd (%p1423_p9), [#allocation3], 4294966784  ;;  %p205_p8 = scmp.lt.s32.totalorder %s1637_s19, 1  ;;  %s1574_s14 = smov 122   ;;  %v250_v2 = vld [vmem:[#allocation2] sm:$0xff]  ;;  %vm278_vm0 = vcmask 916480  }
  0x25   : > { %s1575_s20 = smov 123   ;;  %s1576_s22 = smov 124   ;;  %1302 = vmatprep.mubr.msk.f32.mxu0 %vm278_vm0, %v250_v2  ;;  %v256_v3 = vld [vmem:[%s1941_s3 + $0x10] sm:$0xff]  ;;  %v257_v4 = vld [vmem:[%s1941_s3 + $0x18] sm:$0xff]  ;;  %v1580_v5 = vmov 0   ;;  %v255_v6 = vld [vmem:[%s1941_s3 + $0x8] sm:$0xff] }
  0x26   : > { %s206_s9 = scalar_select %p205_p8, %s1637_s19, 1  ;;  %1478 = vset.pattern.permute.xlu1 %v1580_v5  ;;  %1477 = vset.pattern.permute.xlu0 %v1580_v5  ;;  %v254_v7 = vld [vmem:[%s1941_s3] sm:$0xff]  ;;  %v251_v20 = vld [vmem:[#allocation2 + $0x8] sm:$0xff]  ;;  %v252_v21 = vld [vmem:[#allocation2 + $0x10] sm:$0xff]  ;;  %vm445_vm5 = vcmask 785408   ;;  %vm1589_vm15 = vmmov 0  }
  0x27   : > { %s1577_s23 = smov 125   ;;  %s1578_s27 = smov 126   ;;  %v253_v22 = vld [vmem:[#allocation2 + $0x18] sm:$0xff]  ;;  %v416_v43 = vld [vmem:[%s1940_s2] sm:$0xff]  ;;  %v1163_v45 = vld [vmem:[%s1941_s3 + $0x30] sm:$0xff] }
  0x28   : > { %s1202_s10 = sshll.u32 %s206_s9, 4  ;;  %s1579_s28 = smov 127   ;;  %1332 = vmatprep.mubr.msk.f32.mxu1 %vm445_vm5, %v416_v43  ;;  %v1164_v44 = vld [vmem:[%s1941_s3 + $0x38] sm:$0xff]  ;;  %v1162_v46 = vld [vmem:[%s1941_s3 + $0x28] sm:$0xff]  ;;  %v1161_v47 = vld [vmem:[%s1941_s3 + $0x20] sm:$0xff] }
  0x29   : > { %s209_s13 = scalar_lea.vmem %s1938_s0, %s1202_s10  ;;  %v417_v56 = vld [vmem:[%s1940_s2 + $0x8] sm:$0xff]  ;;  %v418_v57 = vld [vmem:[%s1940_s2 + $0x10] sm:$0xff]  ;;  %v419_v58 = vld [vmem:[%s1940_s2 + $0x18] sm:$0xff]  ;;  %s1582_s7 = smov 1  }
  0x2a   : > { %v1687_v0 = vld [vmem:[%s209_s13 + $0x8] sm:$0xff]  ;;  %v1692_v1 = vld [vmem:[%s209_s13] sm:$0xff]  ;;  %s1583_s8 = smov 3   ;;  %s1584_s9 = smov 2  }
  0x2b   : > { %246 = vrot.lane.b32.xlu0 %v1687_v0, %s1574_s14  ;;  %240 = vrot.lane.b32.xlu1 %v1687_v0, %s1575_s20  ;;  %s1585_s10 = smov 4   ;;  %s1586_s11 = smov 5  }
  0x2c   : > { %s1587_s12 = smov 6   ;;  %s1588_s13 = smov 7  }
  0x2d   : > { %s203_s29 = sand.u32 1, %s1561_s16   ;;  %s1199_s30 = sshll.u32 %s1637_s19, 4 }
  0x2e   : > { %s204_s5 = scalar_lea.vmem [#allocation5], %s203_s29  ;;  %s1590_s19 = smov [#allocation5]  }
  0x2f   : > { %244 = vrot.lane.b32.xlu0 %v1692_v1, %s1574_s14  ;;  %238 = vrot.lane.b32.xlu1 %v1692_v1, %s1575_s20  ;;  %s1082_s6 = sshll.u32 %s204_s5, 4  ;;  %s1899_s6 = int_to_ptr.vmem [resolvable:$true] %s1082_s6 }
  0x33   : > { %234 = vrot.lane.b32.xlu0 %v1687_v0, %s1576_s22  ;;  %232 = vrot.lane.b32.xlu1 %v1692_v1, %s1576_s22 }
  0x37   : > { %228 = vrot.lane.b32.xlu0 %v1687_v0, %s1577_s23  ;;  %226 = vrot.lane.b32.xlu1 %v1692_v1, %s1577_s23 }
  0x3b   : > { %222 = vrot.lane.b32.xlu0 %v1687_v0, %s1578_s27  ;;  %220 = vrot.lane.b32.xlu1 %v1692_v1, %s1578_s27 }
  0x3f   : > { %216 = vrot.lane.b32.xlu0 %v1687_v0, %s1579_s28  ;;  %214 = vrot.lane.b32.xlu1 %v1692_v1, %s1579_s28 }
  0x43   : > { %270 = vperm.xlu1 %1478, %v256_v3   ;;  %275 = vperm.xlu0 %1477, %v257_v4  }
  0x47   : > { %265 = vperm.xlu1 %1478, %v255_v6   ;;  %260 = vperm.xlu0 %1477, %v254_v7  }
  0x9d   : > { %v247_v8 = vpop.permute.xlu0 %246  ;;  %v241_v9 = vpop.permute.xlu1 %240 }
  0x9e   : > { %1274 = vmatprep.subr.mxu0 %v247_v8 }
  0x9f   : > { %1275 = vmatpush3.msra.mxu0 %v247_v8 }
  0xa1   : > { %v245_v10 = vpop.permute.xlu0 %244  ;;  %v239_v11 = vpop.permute.xlu1 %238 }
  0xa2   : > { %1276 = vmatprep.subr.mxu0 %v245_v10 }
  0xa3   : > { %1277 = vmatpush3.msra.mxu0 %v245_v10 }
  0xa4   : > { %1278 = vmatprep.subr.mxu0 %v241_v9 }
  0xa5   : > { %1279 = vmatpush3.msra.mxu0 %v241_v9  ;;  %v235_v12 = vpop.permute.xlu0 %234  ;;  %v233_v13 = vpop.permute.xlu1 %232 }
  0xa6   : > { %1280 = vmatprep.subr.mxu0 %v239_v11 }
  0xa7   : > { %1281 = vmatpush3.msra.mxu0 %v239_v11 }
  0xa8   : > { %1282 = vmatprep.subr.mxu0 %v235_v12 }
  0xa9   : > { %1283 = vmatpush3.msra.mxu0 %v235_v12  ;;  %v229_v14 = vpop.permute.xlu0 %228  ;;  %v227_v15 = vpop.permute.xlu1 %226 }
  0xaa   : > { %1284 = vmatprep.subr.mxu0 %v233_v13 }
  0xab   : > { %1285 = vmatpush3.msra.mxu0 %v233_v13 }
  0xac   : > { %1286 = vmatprep.subr.mxu0 %v229_v14 }
  0xad   : > { %1287 = vmatpush3.msra.mxu0 %v229_v14  ;;  %v223_v16 = vpop.permute.xlu0 %222  ;;  %v221_v17 = vpop.permute.xlu1 %220 }
  0xae   : > { %1288 = vmatprep.subr.mxu0 %v227_v15 }
  0xaf   : > { %1289 = vmatpush3.msra.mxu0 %v227_v15 }
  0xb0   : > { %1290 = vmatprep.subr.mxu0 %v223_v16 }
  0xb1   : > { %1291 = vmatpush3.msra.mxu0 %v223_v16  ;;  %v217_v18 = vpop.permute.xlu0 %216  ;;  %v215_v19 = vpop.permute.xlu1 %214 }
  0xb2   : > { %1292 = vmatprep.subr.mxu0 %v221_v17 }
  0xb3   : > { %1293 = vmatpush3.msra.mxu0 %v221_v17 }
  0xb4   : > { %1294 = vmatprep.subr.mxu0 %v217_v18 }
  0xb5   : > { %1295 = vmatpush3.msra.mxu0 %v217_v18 }
  0xb6   : > { %1296 = vmatprep.subr.mxu0 %v215_v19 }
  0xb7   : > { %1297 = vmatpush3.msra.mxu0 %v215_v19 }
  0xb8   : > { %1298 = vmatprep.subr.mxu0 %v1687_v0 }
  0xb9   : > { %1299 = vmatpush3.msra.mxu0 %v1687_v0 }
  0xba   : > { %1300 = vmatprep.subr.mxu0 %v1692_v1 }
  0xbb   : > { %1301 = vmatpush3.msra.mxu0 %v1692_v1 }
  0xbc   : > { %1303 = vmatmul.mubr.msk.f32.vlgmr.msra.gmra.mxu0 %vm278_vm0, %v251_v20 }
  0xbd   : > { %1305 = vmatprep.mubr.msk.f32.mxu0 %vm278_vm0, %v252_v21 }
  0xbe   : > { %v271_v23 = vpop.permute.xlu1 %270  ;;  %v276_v24 = vpop.permute.xlu0 %275 }
  0xc0   : > { %1306 = vmatmul.mubr.msk.f32.gmra.mxu0 %vm278_vm0, %v253_v22  ;;  %vm966_vm0 = vcmask 7168  }
  0xc2   : > { %v266_v26 = vpop.permute.xlu1 %265  ;;  %v261_v28 = vpop.permute.xlu0 %260 }
 0x17c   : > { %v1304_v25 = vpop.f32.mrf.mxu0 }
 0x17d   : > { %v363_v30 = vadd.f32 %v1304_v25, %v266_v26  ;;  %v1175_v25 = vld [vmem:[%s1941_s3 + $0x50] sm:$0xff]  ;;  %v1174_v26 = vld [vmem:[%s1941_s3 + $0x48] sm:$0xff] }
 0x17e   : > { %v357_v27 = vpop.f32.mrf.mxu0 }
 0x17f   : > { %v358_v33 = vadd.f32 %v357_v27, %v261_v28  ;;  %v381_v38 = vmul.f32 0.1, %v363_v30  ;;  %vm377_vm3 = vcmp.ge.f32.partialorder %v363_v30, 0.0  ;;  %v1173_v27 = vld [vmem:[%s1941_s3 + $0x40] sm:$0xff] }
 0x180   : > { %v1307_v29 = vpop.f32.mrf.mxu0 }
 0x181   : > { %v373_v31 = vadd.f32 %v1307_v29, %v276_v24  ;;  %v380_v40 = vmul.f32 0.1, %v358_v33  ;;  %vm376_vm4 = vcmp.ge.f32.partialorder %v358_v33, 0.0  ;;  %v385_v41 = vsel %vm377_vm3, %v363_v30, %v381_v38  ;;  %v1176_v24 = vld [vmem:[%s1941_s3 + $0x58] sm:$0xff] }
 0x182   : > { %v367_v32 = vpop.f32.mrf.mxu0  ;;  %v1172_v38 = vld [vmem:[%s1940_s2 + $0x38] sm:$0xff]  ;;  %vm981_vm3 = vcmask 64512  }
 0x183   : > { %v368_v34 = vadd.f32 %v367_v32, %v271_v23  ;;  %vm379_vm1 = vcmp.ge.f32.partialorder %v373_v31, 0.0  ;;  %v383_v35 = vmul.f32 0.1, %v373_v31  ;;  %v384_v42 = vsel %vm376_vm4, %v358_v33, %v380_v40  ;;  %v1169_v23 = vld [vmem:[%s1940_s2 + $0x20] sm:$0xff] }
 0x184   : > { %vm972_vm4 = vcmask 31744  }
 0x185   : > { %v387_v36 = vsel %vm379_vm1, %v373_v31, %v383_v35  ;;  %vm378_vm2 = vcmp.ge.f32.partialorder %v368_v34, 0.0  ;;  %v382_v37 = vmul.f32 0.1, %v368_v34  ;;  %vm968_vm1 = vcmask 15360  }
 0x186   : > { %410 = vrot.lane.b32.xlu1 %v387_v36, %s1574_s14 }
 0x187   : > { %v386_v39 = vsel %vm378_vm2, %v368_v34, %v382_v37  ;;  %v1171_v37 = vld [vmem:[%s1940_s2 + $0x30] sm:$0xff]  ;;  %vm970_vm2 = vcmask 23552  }
 0x188   : > { %408 = vrot.lane.b32.xlu0 %v386_v39, %s1574_s14 }
 0x18a   : > { %406 = vrot.lane.b32.xlu1 %v385_v41, %s1574_s14 }
 0x18c   : > { %404 = vrot.lane.b32.xlu0 %v384_v42, %s1574_s14 }
 0x18e   : > { %398 = vrot.lane.b32.xlu1 %v387_v36, %s1577_s23 }
 0x190   : > { %396 = vrot.lane.b32.xlu0 %v386_v39, %s1577_s23 }
 0x192   : > { %394 = vrot.lane.b32.xlu1 %v385_v41, %s1577_s23 }
 0x194   : > { %392 = vrot.lane.b32.xlu0 %v384_v42, %s1577_s23 }
 0x196   : > { %442 = vperm.xlu1 %1478, %v1164_v44  }
 0x198   : > { %437 = vperm.xlu0 %1477, %v1163_v45  }
 0x19a   : > { %432 = vperm.xlu1 %1478, %v1162_v46  }
 0x19c   : > { %427 = vperm.xlu0 %1477, %v1161_v47  }
 0x19e   : > { %553 = vrot.lane.b32.xlu1 %v373_v31, %s1577_s23 }
 0x1a0   : > { %551 = vrot.lane.b32.xlu0 %v368_v34, %s1577_s23 }
 0x1a2   : > { %549 = vrot.lane.b32.xlu1 %v363_v30, %s1577_s23 }
 0x1a4   : > { %547 = vrot.lane.b32.xlu0 %v358_v33, %s1577_s23 }
 0x1f8   : > { %v411_v48 = vpop.permute.xlu1 %410 }
 0x1f9   : > { %1308 = vmatprep.subr.mxu1 %v411_v48 }
 0x1fa   : > { %1309 = vmatpush3.msra.mxu1 %v411_v48  ;;  %v409_v49 = vpop.permute.xlu0 %408 }
 0x1fb   : > { %1310 = vmatprep.subr.mxu1 %v409_v49 }
 0x1fc   : > { %v407_v50 = vpop.permute.xlu1 %406  ;;  %1311 = vmatpush3.msra.mxu1 %v409_v49 }
 0x1fd   : > { %1312 = vmatprep.subr.mxu1 %v407_v50 }
 0x1fe   : > { %1313 = vmatpush3.msra.mxu1 %v407_v50  ;;  %v405_v51 = vpop.permute.xlu0 %404 }
 0x1ff   : > { %1314 = vmatprep.subr.mxu1 %v405_v51 }
 0x200   : > { %v399_v52 = vpop.permute.xlu1 %398  ;;  %1315 = vmatpush3.msra.mxu1 %v405_v51 }
 0x201   : > { %1316 = vmatprep.subr.mxu1 %v399_v52 }
 0x202   : > { %1317 = vmatpush3.msra.mxu1 %v399_v52  ;;  %v397_v53 = vpop.permute.xlu0 %396 }
 0x203   : > { %1318 = vmatprep.subr.mxu1 %v397_v53 }
 0x204   : > { %v395_v54 = vpop.permute.xlu1 %394  ;;  %1319 = vmatpush3.msra.mxu1 %v397_v53 }
 0x205   : > { %1320 = vmatprep.subr.mxu1 %v395_v54 }
 0x206   : > { %1321 = vmatpush3.msra.mxu1 %v395_v54  ;;  %v393_v55 = vpop.permute.xlu0 %392 }
 0x207   : > { %1322 = vmatprep.subr.mxu1 %v393_v55 }
 0x208   : > { %1323 = vmatpush3.msra.mxu1 %v393_v55 }
 0x209   : > { %1324 = vmatprep.subr.mxu1 %v387_v36 }
 0x20a   : > { %1325 = vmatpush3.msra.mxu1 %v387_v36  ;;  %v1170_v36 = vld [vmem:[%s1940_s2 + $0x28] sm:$0xff] }
 0x20b   : > { %1326 = vmatprep.subr.mxu1 %v386_v39 }
 0x20c   : > { %1327 = vmatpush3.msra.mxu1 %v386_v39  ;;  %v1581_v39 = vmov 0.0  }
 0x20d   : > { %1328 = vmatprep.subr.mxu1 %v385_v41 }
 0x20e   : > { %1329 = vmatpush3.msra.mxu1 %v385_v41 }
 0x20f   : > { %1330 = vmatprep.subr.mxu1 %v384_v42 }
 0x210   : > { %1331 = vmatpush3.msra.mxu1 %v384_v42 }
 0x211   : > { %1333 = vmatmul.mubr.msk.f32.vlgmr.msra.gmra.mxu1 %vm445_vm5, %v417_v56  ;;  %v443_v59 = vpop.permute.xlu1 %442 }
 0x212   : > { %1335 = vmatprep.mubr.msk.f32.mxu1 %vm445_vm5, %v418_v57 }
 0x213   : > { %v438_v60 = vpop.permute.xlu0 %437 }
 0x215   : > { %1336 = vmatmul.mubr.msk.f32.gmra.mxu1 %vm445_vm5, %v419_v58  ;;  %v433_v61 = vpop.permute.xlu1 %432 }
 0x216   : > { %1362 = vmatprep.mubr.msk.f32.mxu1 %vm445_vm5, %v1169_v23  ;;  %v1184_v23 = vld [vmem:[%s1940_s2 + $0x58] sm:$0xff] }
 0x217   : > { %v428_v62 = vpop.permute.xlu0 %427 }
 0x219   : > { %v554_v63 = vpop.permute.xlu1 %553 }
 0x21b   : > { %v552_v1 = vpop.permute.xlu0 %551 }
 0x21d   : > { %v550_v7 = vpop.permute.xlu1 %549 }
 0x21f   : > { %v548_v12 = vpop.permute.xlu0 %547 }
 0x2d1   : > { %v1334_v0 = vpop.f32.mrf.mxu1 }
 0x2d2   : > { %v530_v3 = vadd.f32 %v1334_v0, %v433_v61 }
 0x2d3   : > { %v524_v2 = vpop.f32.mrf.mxu1 }
 0x2d4   : > { %v525_v5 = vadd.f32 %v524_v2, %v428_v62  ;;  %v560_v9 = vadd.f32 %v550_v7, %v530_v3  ;;  %v937_v7 = vlaneseq }
 0x2d5   : > { %v1337_v4 = vpop.f32.mrf.mxu1 }
 0x2d6   : > { %v540_v6 = vadd.f32 %v1337_v4, %v443_v59  ;;  %v559_v13 = vadd.f32 %v548_v12, %v525_v5  ;;  %v568_v18 = vmul.f32 0.1, %v560_v9  ;;  %vm564_vm8 = vcmp.ge.f32.partialorder %v560_v9, 0.0  ;;  %v1181_v4 = vld [vmem:[%s1940_s2 + $0x40] sm:$0xff]  ;;  %v1188_v5 = vld [vmem:[%s1941_s3 + $0x78] sm:$0xff] }
 0x2d7   : > { %v534_v8 = vpop.f32.mrf.mxu1  ;;  %1392 = vmatprep.mubr.msk.f32.mxu0 %vm445_vm5, %v1181_v4 }
 0x2d8   : > { %v562_v10 = vadd.f32 %v554_v63, %v540_v6  ;;  %v535_v11 = vadd.f32 %v534_v8, %v438_v60  ;;  %v567_v20 = vmul.f32 0.1, %v559_v13  ;;  %vm563_vm9 = vcmp.ge.f32.partialorder %v559_v13, 0.0  ;;  %v1187_v6 = vld [vmem:[%s1941_s3 + $0x70] sm:$0xff]  ;;  %v1186_v8 = vld [vmem:[%s1941_s3 + $0x68] sm:$0xff] }
 0x2d9   : > { %v572_v21 = vsel %vm564_vm8, %v560_v9, %v568_v18  ;;  %vm1067_vm8 = vcmask 253952  }
 0x2da   : > { %v561_v14 = vadd.f32 %v552_v1, %v535_v11  ;;  %vm566_vm6 = vcmp.ge.f32.partialorder %v562_v10, 0.0  ;;  %v570_v15 = vmul.f32 0.1, %v562_v10  ;;  %v571_v22 = vsel %vm563_vm9, %v559_v13, %v567_v20  ;;  %v1185_v11 = vld [vmem:[%s1941_s3 + $0x60] sm:$0xff] }
 0x2dc   : > { %v574_v16 = vsel %vm566_vm6, %v562_v10, %v570_v15  ;;  %vm565_vm7 = vcmp.ge.f32.partialorder %v561_v14, 0.0  ;;  %v569_v17 = vmul.f32 0.1, %v561_v14  ;;  %vm976_vm6 = vcmask 48128  }
 0x2dd   : > { %597 = vrot.lane.b32.xlu1 %v574_v16, %s1574_s14 }
 0x2de   : > { %v573_v19 = vsel %vm565_vm7, %v561_v14, %v569_v17  ;;  %vm978_vm7 = vcmask 56320  }
 0x2df   : > { %595 = vrot.lane.b32.xlu0 %v573_v19, %s1574_s14 }
 0x2e1   : > { %593 = vrot.lane.b32.xlu1 %v572_v21, %s1574_s14 }
 0x2e3   : > { %591 = vrot.lane.b32.xlu0 %v571_v22, %s1574_s14 }
 0x2e5   : > { %585 = vrot.lane.b32.xlu1 %v574_v16, %s1577_s23 }
 0x2e7   : > { %583 = vrot.lane.b32.xlu0 %v573_v19, %s1577_s23 }
 0x2e9   : > { %581 = vrot.lane.b32.xlu1 %v572_v21, %s1577_s23 }
 0x2eb   : > { %579 = vrot.lane.b32.xlu0 %v571_v22, %s1577_s23 }
 0x2ed   : > { %630 = vperm.xlu1 %1478, %v1176_v24  }
 0x2ef   : > { %625 = vperm.xlu0 %1477, %v1175_v25  }
 0x2f1   : > { %620 = vperm.xlu1 %1478, %v1174_v26  }
 0x2f3   : > { %615 = vperm.xlu0 %1477, %v1173_v27  }
 0x2f5   : > { %740 = vrot.lane.b32.xlu1 %v562_v10, %s1577_s23  ;;  %v940_v10 = vand.u32 127, %v937_v7 }
 0x2f7   : > { %738 = vrot.lane.b32.xlu0 %v561_v14, %s1577_s23 }
 0x2f9   : > { %736 = vrot.lane.b32.xlu1 %v560_v9, %s1577_s23  ;;  %v938_v9 = vshrl.u32 %v937_v7, 7 }
 0x2fb   : > { %734 = vrot.lane.b32.xlu0 %v559_v13, %s1577_s23  ;;  %vm941_vm14 = vcmp.eq.s32.totalorder %v938_v9, %v940_v10 }
 0x2fc   : > { %v1851_v12 = vsel %vm941_vm14, 1.0, %v1581_v39 }
 0x34f   : > { %v598_v28 = vpop.permute.xlu1 %597 }
 0x350   : > { %1338 = vmatprep.subr.mxu1 %v598_v28 }
 0x351   : > { %1339 = vmatpush3.msra.mxu1 %v598_v28  ;;  %v596_v29 = vpop.permute.xlu0 %595 }
 0x352   : > { %1340 = vmatprep.subr.mxu1 %v596_v29 }
 0x353   : > { %v594_v30 = vpop.permute.xlu1 %593  ;;  %1341 = vmatpush3.msra.mxu1 %v596_v29 }
 0x354   : > { %1342 = vmatprep.subr.mxu1 %v594_v30 }
 0x355   : > { %1343 = vmatpush3.msra.mxu1 %v594_v30  ;;  %v592_v31 = vpop.permute.xlu0 %591 }
 0x356   : > { %1344 = vmatprep.subr.mxu1 %v592_v31 }
 0x357   : > { %v586_v32 = vpop.permute.xlu1 %585  ;;  %1345 = vmatpush3.msra.mxu1 %v592_v31 }
 0x358   : > { %1346 = vmatprep.subr.mxu1 %v586_v32 }
 0x359   : > { %1347 = vmatpush3.msra.mxu1 %v586_v32  ;;  %v584_v33 = vpop.permute.xlu0 %583 }
 0x35a   : > { %1348 = vmatprep.subr.mxu1 %v584_v33 }
 0x35b   : > { %v582_v34 = vpop.permute.xlu1 %581  ;;  %1349 = vmatpush3.msra.mxu1 %v584_v33 }
 0x35c   : > { %1350 = vmatprep.subr.mxu1 %v582_v34 }
 0x35d   : > { %1351 = vmatpush3.msra.mxu1 %v582_v34  ;;  %v580_v35 = vpop.permute.xlu0 %579 }
 0x35e   : > { %1352 = vmatprep.subr.mxu1 %v580_v35 }
 0x35f   : > { %1353 = vmatpush3.msra.mxu1 %v580_v35 }
 0x360   : > { %1354 = vmatprep.subr.mxu1 %v574_v16 }
 0x361   : > { %1355 = vmatpush3.msra.mxu1 %v574_v16 }
 0x362   : > { %1356 = vmatprep.subr.mxu1 %v573_v19 }
 0x363   : > { %1357 = vmatpush3.msra.mxu1 %v573_v19 }
 0x364   : > { %1358 = vmatprep.subr.mxu1 %v572_v21 }
 0x365   : > { %1359 = vmatpush3.msra.mxu1 %v572_v21  ;;  %v1182_v21 = vld [vmem:[%s1940_s2 + $0x48] sm:$0xff] }
 0x366   : > { %1360 = vmatprep.subr.mxu1 %v571_v22 }
 0x367   : > { %1361 = vmatpush3.msra.mxu1 %v571_v22  ;;  %v1183_v22 = vld [vmem:[%s1940_s2 + $0x50] sm:$0xff] }
 0x368   : > { %1363 = vmatmul.mubr.msk.f32.vlgmr.msra.gmra.mxu1 %vm445_vm5, %v1170_v36  ;;  %1398 = vmatprep.subr.mxu1 %v1581_v39  ;;  %v631_v40 = vpop.permute.xlu1 %630 }
 0x369   : > { %1365 = vmatprep.mubr.msk.f32.mxu1 %vm445_vm5, %v1171_v37 }
 0x36a   : > { %v626_v41 = vpop.permute.xlu0 %625 }
 0x36c   : > { %1366 = vmatmul.mubr.msk.f32.gmra.mxu1 %vm445_vm5, %v1172_v38  ;;  %v621_v42 = vpop.permute.xlu1 %620 }
 0x36d   : > { %1406 = vmatprep.mubr.msk.f32.mxu1 %vm1589_vm15, %v1581_v39 }
 0x36e   : > { %v616_v43 = vpop.permute.xlu0 %615 }
 0x370   : > { %v741_v44 = vpop.permute.xlu1 %740 }
 0x372   : > { %v739_v46 = vpop.permute.xlu0 %738 }
 0x374   : > { %v737_v52 = vpop.permute.xlu1 %736 }
 0x376   : > { %v735_v57 = vpop.permute.xlu0 %734 }
 0x428   : > { %v1364_v45 = vpop.f32.mrf.mxu1 }
 0x429   : > { %v717_v48 = vadd.f32 %v1364_v45, %v621_v42 }
 0x42a   : > { %v711_v47 = vpop.f32.mrf.mxu1 }
 0x42b   : > { %v712_v50 = vadd.f32 %v711_v47, %v616_v43  ;;  %v747_v54 = vadd.f32 %v737_v52, %v717_v48 }
 0x42c   : > { %v1367_v49 = vpop.f32.mrf.mxu1 }
 0x42d   : > { %v727_v51 = vadd.f32 %v1367_v49, %v631_v40  ;;  %v746_v58 = vadd.f32 %v735_v57, %v712_v50  ;;  %v755_v63 = vmul.f32 0.1, %v747_v54  ;;  %vm751_vm12 = vcmp.ge.f32.partialorder %v747_v54, 0.0 }
 0x42e   : > { %v721_v53 = vpop.f32.mrf.mxu1 }
 0x42f   : > { %v749_v55 = vadd.f32 %v741_v44, %v727_v51  ;;  %v722_v56 = vadd.f32 %v721_v53, %v626_v41  ;;  %v754_v1 = vmul.f32 0.1, %v746_v58  ;;  %vm750_vm13 = vcmp.ge.f32.partialorder %v746_v58, 0.0 }
 0x430   : > { %v1816_v2 = vsel %vm751_vm12, %v747_v54, %v755_v63 }
 0x431   : > { %v748_v59 = vadd.f32 %v739_v46, %v722_v56  ;;  %vm753_vm10 = vcmp.ge.f32.partialorder %v749_v55, 0.0  ;;  %v757_v60 = vmul.f32 0.1, %v749_v55  ;;  %v1820_v3 = vsel %vm750_vm13, %v746_v58, %v754_v1 }
 0x433   : > { %v1808_v61 = vsel %vm753_vm10, %v749_v55, %v757_v60  ;;  %vm752_vm11 = vcmp.ge.f32.partialorder %v748_v59, 0.0  ;;  %v756_v62 = vmul.f32 0.1, %v748_v59 }
 0x434   : > { %784 = vrot.lane.b32.xlu1 %v1808_v61, %s1574_s14 }
 0x435   : > { %v1812_v0 = vsel %vm752_vm11, %v748_v59, %v756_v62 }
 0x436   : > { %782 = vrot.lane.b32.xlu0 %v1812_v0, %s1574_s14 }
 0x438   : > { %780 = vrot.lane.b32.xlu1 %v1816_v2, %s1574_s14 }
 0x43a   : > { %778 = vrot.lane.b32.xlu0 %v1820_v3, %s1574_s14 }
 0x43c   : > { %772 = vrot.lane.b32.xlu1 %v1808_v61, %s1577_s23 }
 0x43e   : > { %770 = vrot.lane.b32.xlu0 %v1812_v0, %s1577_s23 }
 0x440   : > { %768 = vrot.lane.b32.xlu1 %v1816_v2, %s1577_s23 }
 0x442   : > { %766 = vrot.lane.b32.xlu0 %v1820_v3, %s1577_s23 }
 0x444   : > { %817 = vperm.xlu1 %1478, %v1188_v5  }
 0x446   : > { %812 = vperm.xlu0 %1477, %v1187_v6  }
 0x448   : > { %927 = vrot.lane.b32.xlu1 %v749_v55, %s1577_s23 }
 0x44a   : > { %807 = vperm.xlu0 %1477, %v1186_v8  }
 0x44c   : > { %925 = vrot.lane.b32.xlu1 %v748_v59, %s1577_s23 }
 0x44e   : > { %802 = vperm.xlu0 %1477, %v1185_v11  }
 0x450   : > { %923 = vrot.lane.b32.xlu1 %v747_v54, %s1577_s23 }
 0x452   : > { %945 = vrot.lane.b32.xlu0 %v1851_v12, %s1582_s7 }
 0x454   : > { %948 = vrot.lane.b32.xlu1 %v1851_v12, %s1584_s9  ;;  %s1897_s9 = scalar_lea.hbm %s1942_s4, %s1199_s30 }
 0x456   : > { %951 = vrot.lane.b32.xlu0 %v1851_v12, %s1583_s8 }
 0x458   : > { %954 = vrot.lane.b32.xlu1 %v1851_v12, %s1585_s10  ;;  %s1070_s10 = scalar_lea.sflag [#allocation4], %s203_s29 }
 0x45a   : > { %921 = vrot.lane.b32.xlu0 %v746_v58, %s1577_s23 }
 0x45c   : > { %957 = vrot.lane.b32.xlu1 %v1851_v12, %s1586_s11  ;;  %s1505_s11 = scalar_lea.vmem %s1899_s6, 16 }
 0x45d   : > { %p1506_p6 = scmp.ne.s32.totalorder %s1899_s6, %s1505_s11 }
 0x45e   : > { %960 = vrot.lane.b32.xlu0 %v1851_v12, %s1587_s12  ;;  %s1509_s12 = sshll.u32 %s1590_s19, 4  ;;  %s1510_s12 = int_to_ptr.vmem [resolvable:$false] %s1509_s12 }
 0x45f   : > { %p1507_p9 = pnand %p1506_p6, %p1654_p5  ;;  %p1512_p11 = scmp.lt.s32.totalorder %s1899_s6, %s1510_s12 }
 0x460   : > { %963 = vrot.lane.b32.xlu1 %v1851_v12, %s1588_s13  ;;  %s1511_s13 = scalar_lea.vmem %s1510_s12, 32 }
 0x461   : > { %p1508_p10 = pneg %p1507_p9  ;;  %p1513_p12 = scmp.lt.s32.totalorder %s1511_s13, %s1505_s11 }
 0x463   : > { %p1514_p13 = por %p1513_p12, %p1512_p11 }
 0x465   : > { %p1515_p0 = pnand %p1514_p13, %p1508_p10 }
 0x4a6   : > { %v785_v13 = vpop.permute.xlu1 %784 }
 0x4a7   : > { %1368 = vmatprep.subr.mxu0 %v785_v13 }
 0x4a8   : > { %1369 = vmatpush3.msra.mxu0 %v785_v13  ;;  %v783_v14 = vpop.permute.xlu0 %782 }
 0x4a9   : > { %1370 = vmatprep.subr.mxu0 %v783_v14 }
 0x4aa   : > { %v781_v15 = vpop.permute.xlu1 %780  ;;  %1371 = vmatpush3.msra.mxu0 %v783_v14 }
 0x4ab   : > { %1372 = vmatprep.subr.mxu0 %v781_v15 }
 0x4ac   : > { %1373 = vmatpush3.msra.mxu0 %v781_v15  ;;  %v779_v16 = vpop.permute.xlu0 %778 }
 0x4ad   : > { %1374 = vmatprep.subr.mxu0 %v779_v16 }
 0x4ae   : > { %v773_v17 = vpop.permute.xlu1 %772  ;;  %1375 = vmatpush3.msra.mxu0 %v779_v16 }
 0x4af   : > { %1376 = vmatprep.subr.mxu0 %v773_v17 }
 0x4b0   : > { %1377 = vmatpush3.msra.mxu0 %v773_v17  ;;  %v771_v18 = vpop.permute.xlu0 %770 }
 0x4b1   : > { %1378 = vmatprep.subr.mxu0 %v771_v18 }
 0x4b2   : > { %v769_v19 = vpop.permute.xlu1 %768  ;;  %1379 = vmatpush3.msra.mxu0 %v771_v18 }
 0x4b3   : > { %1380 = vmatprep.subr.mxu0 %v769_v19 }
 0x4b4   : > { %1381 = vmatpush3.msra.mxu0 %v769_v19  ;;  %v767_v20 = vpop.permute.xlu0 %766 }
 0x4b5   : > { %1382 = vmatprep.subr.mxu0 %v767_v20 }
 0x4b6   : > { %1383 = vmatpush3.msra.mxu0 %v767_v20 }
 0x4b7   : > { %1384 = vmatprep.subr.mxu0 %v1808_v61 }
 0x4b8   : > { %1385 = vmatpush3.msra.mxu0 %v1808_v61 }
 0x4b9   : > { %1386 = vmatprep.subr.mxu0 %v1812_v0 }
 0x4ba   : > { %1387 = vmatpush3.msra.mxu0 %v1812_v0 }
 0x4bb   : > { %1388 = vmatprep.subr.mxu0 %v1816_v2 }
 0x4bc   : > { %1389 = vmatpush3.msra.mxu0 %v1816_v2 }
 0x4bd   : > { %1390 = vmatprep.subr.mxu0 %v1820_v3 }
 0x4be   : > { %1391 = vmatpush3.msra.mxu0 %v1820_v3 }
 0x4bf   : > { %1393 = vmatmul.mubr.msk.f32.vlgmr.msra.gmra.mxu0 %vm445_vm5, %v1182_v21  ;;  %v818_v24 = vpop.permute.xlu1 %817 }
 0x4c0   : > { %1395 = vmatprep.mubr.msk.f32.mxu0 %vm445_vm5, %v1183_v22 }
 0x4c1   : > { %v813_v25 = vpop.permute.xlu0 %812 }
 0x4c3   : > { %1396 = vmatmul.mubr.msk.f32.gmra.mxu0 %vm445_vm5, %v1184_v23  ;;  %v928_v26 = vpop.permute.xlu1 %927  ;;  %vm974_vm5 = vcmask 39936  }
 0x4c5   : > { %v808_v27 = vpop.permute.xlu0 %807 }
 0x4c7   : > { %v926_v28 = vpop.permute.xlu1 %925 }
 0x4c9   : > { %v803_v29 = vpop.permute.xlu0 %802 }
 0x4cb   : > { %v924_v30 = vpop.permute.xlu1 %923 }
 0x4cd   : > { %v946_v31 = vpop.permute.xlu0 %945 }
 0x4ce   : > { %v967_v34 = vsel %vm966_vm0, %v1851_v12, %v946_v31 }
 0x4cf   : > { %v949_v32 = vpop.permute.xlu1 %948 }
 0x4d0   : > { %v969_v37 = vsel %vm968_vm1, %v967_v34, %v949_v32 }
 0x4d1   : > { %v952_v36 = vpop.permute.xlu0 %951 }
 0x4d2   : > { %v971_v44 = vsel %vm970_vm2, %v969_v37, %v952_v36 }
 0x4d3   : > { %v955_v40 = vpop.permute.xlu1 %954 }
 0x4d4   : > { %v973_v47 = vsel %vm972_vm4, %v971_v44, %v955_v40 }
 0x4d5   : > { %v922_v46 = vpop.permute.xlu0 %921 }
 0x4d7   : > { %v958_v48 = vpop.permute.xlu1 %957 }
 0x4d8   : > { %v975_v51 = vsel %vm974_vm5, %v973_v47, %v958_v48 }
 0x4d9   : > { %v961_v52 = vpop.permute.xlu0 %960 }
 0x4da   : > { %v977_v55 = vsel %vm976_vm6, %v975_v51, %v961_v52 }
 0x4db   : > { %v964_v56 = vpop.permute.xlu1 %963 }
 0x4dc   : > { %v979_v58 = vsel %vm978_vm7, %v977_v55, %v964_v56 }
 0x4dd   : > { %v980_v59 = vmul.f32 0.125, %v979_v58 }
 0x57f   : > { %v1394_v33 = vpop.f32.mrf.mxu0 }
 0x580   : > { %v904_v49 = vadd.f32 %v1394_v33, %v808_v27 }
 0x581   : > { %v898_v35 = vpop.f32.mrf.mxu0 }
 0x582   : > { %v934_v53 = vadd.f32 %v924_v30, %v904_v49  ;;  %v899_v54 = vadd.f32 %v898_v35, %v803_v29 }
 0x583   : > { %v1397_v38 = vpop.f32.mrf.mxu0 }
 0x584   : > { %v914_v41 = vadd.f32 %v1397_v38, %v818_v24  ;;  %v933_v57 = vadd.f32 %v922_v46, %v899_v54 }
 0x585   : > { %v908_v42 = vpop.f32.mrf.mxu0 }
 0x586   : > { %v936_v43 = vadd.f32 %v928_v26, %v914_v41  ;;  %v909_v45 = vadd.f32 %v908_v42, %v813_v25 }
 0x588   : > { %1399 = vmatpush3.xpose.msk.msra.mxu1 %vm981_vm3, %v936_v43  ;;  %v935_v50 = vadd.f32 %v926_v28, %v909_v45 }
 0x589   : > { %1400 = vmatprep.subr.mxu1 %v1581_v39 }
 0x58c   : > { %1401 = vmatpush3.xpose.msk.msra.mxu1 %vm981_vm3, %v935_v50 }
 0x58d   : > { %1402 = vmatprep.subr.mxu1 %v1581_v39 }
 0x590   : > { %1403 = vmatpush3.xpose.msk.msra.mxu1 %vm981_vm3, %v934_v53 }
 0x591   : > { %1404 = vmatprep.subr.mxu1 %v1581_v39 }
 0x594   : > { %1405 = vmatpush3.xpose.msk.msra.mxu1 %vm981_vm3, %v933_v57 }
 0x597   : > { %1407 = vmatmul.mubr.msk.f32.vlgmr.msra.gmra.mxu1 %vm981_vm3, %v980_v59 }
 0x657   : > { %v1063_v39 = vpop.f32.mrf.mxu1 }
 0x658   : > { %1068 = vst.msk [vmem:[%s204_s5] sm:$0x1] %vm1067_vm8, %v1063_v39 }
 0x659   : > { %v1408_v60 = vpop.f32.mrf.mxu1 }
 0x65a   : > { %1518 = shalt.err (!%p1515_p0)
}
 0x65b   : > { %s1519_s23 = scalar_lea.hbm %s1897_s9, 16  ;;  %s1523_s27 = scalar_lea.hbm %s1942_s4, 32 }
 0x65c   : > { %p1520_p1 = scmp.ne.s32.totalorder %s1897_s9, %s1519_s23  ;;  %p1524_p4 = scmp.lt.s32.totalorder %s1897_s9, %s1942_s4 }
 0x65d   : > { %p1525_p7 = scmp.lt.s32.totalorder %s1523_s27, %s1519_s23 }
 0x65e   : > { %p1521_p2 = pnand %p1520_p1, %p1654_p5 }
 0x65f   : > { %p1526_p8 = por %p1525_p7, %p1524_p4 }
 0x660   : > { %p1522_p3 = pneg %p1521_p2 }
 0x662   : > { %p1527_p6 = pnand %p1526_p8, %p1522_p3 }
 0x664   : > { %1530 = shalt.err (!%p1527_p6)
}
 0x665   : > { %1413 = dma.vmem_to_hbm [thread:$0]  (%p1654_p5), %s1899_s6, 16, %s1897_s9, %s1070_s10  }
 0x666 PF: > { %p1425_p9 = scmp.ge.s32.totalorder %s1569_s18, 2  ;;  %s1094_s29 = sand.u32 1, %s1557_s15  }
 0x667   : > { %p1946_p10 = scmp.ne.s32.totalorder %s1944_s26, 0  ;;  %s1095_s30 = scalar_lea.sflag [#allocation4], %s1094_s29 }
 0x669   : > { %p1420_p11 = pnand %p1425_p9, %p1946_p10 }
 0x66b   : > { %p1421_p12 = pneg %p1420_p11 }
 0x66d   : > { %1552 = dma.done.wait (%p1421_p12), %s1095_s30, 16  }
 0x66e   : > { %1554 = vsyncadd (%p1421_p12), %s1095_s30, 4294967280  ;;  %p15_p13 = scmp.ge.s32.totalorder %s1641_s21, 4   ;;  %s1947_s15 = smov %s1561_s16 }
 0x66f   : > { %s1948_s16 = smov %s1565_s17  ;;  %s1949_s17 = smov %s1652_s24 }
 0x670   : > { %s1950_s18 = smov %s1641_s21  ;;  %17 = sbr.rel (!%p15_p13) target bundleno = 4 (0x4), region = 81 }
 0x675   :  { %1099 = vsyncpa [#allocation3], 1 }
 0x676   :  { %1101 = vsyncpa [#allocation3 + $0x1], 1 }
 0x677   :  { %1102 = vsyncpa [#allocation4], 1 }
 0x678   :  { %1104 = vsyncpa [#allocation4 + $0x1], 1 }

</bundles_post_ra>
